<compile_context>
chip_gen: v7x
topology: tpu7x:2x2x1
jax: 0.10.0
libtpu: 0.0.40
codegen_flags: <defaults>
</compile_context>

<pallas_src>
import jax
import jax.numpy as jnp
from jax.experimental import pallas as pl
from jax.experimental.pallas import tpu as pltpu

LANE = 128     # TPU lane width (last dim)
SUBLANE = 8    # TPU sublane width (second-to-last dim)


def _round_up(x, m):
    return ((x + m - 1) // m) * m


def _pad_to(x, shape):
    pads = [(0, s - d) for s, d in zip(shape, x.shape)]
    return jnp.pad(x, pads)


def _pad_gate_cols(w_t, H, H_pad):
    """(in_dim, 4H) -> (in_dim, 4*H_pad); gate k lives in cols [k*H_pad, k*H_pad+H)."""
    in_dim = w_t.shape[0]
    out = jnp.zeros((in_dim, 4 * H_pad), w_t.dtype)
    for k in range(4):
        out = out.at[:, k * H_pad:k * H_pad + H].set(w_t[:, k * H:(k + 1) * H])
    return out


def _vmem_limit(nbytes):
    """Estimated need * 2 + 1 MiB headroom, clamped to [16 MiB, 48 MiB] (v7x-safe)."""
    return int(min(max(2 * nbytes + (1 << 20), 16 << 20), 48 << 20))


# ---------------------------------------------------------------------------
# Pallas kernels
# ---------------------------------------------------------------------------

def _lstm_stack_kernel(x0_ref,                  # VMEM (B_pad, IN_pad)  bf16 embedded tokens
                       h0_ref, c0_ref,          # VMEM (B_pad, H_pad)   f32 (this layer)
                       w_ref,                   # VMEM (IN_pad+H_pad, G_pad) bf16 [W_ih; W_hh]
                       bias_ref,                # VMEM (1, G_pad)       f32 (b_ih + b_hh)
                       h_out_ref, c_out_ref,    # VMEM (B_pad, H_pad)   f32 outputs
                       xh_scr):                 # VMEM (B_pad, IN_pad+H_pad) bf16 carry
    layer = pl.program_id(0)
    H_pad = h_out_ref.shape[-1]
    IN_pad = xh_scr.shape[-1] - H_pad

    # Layer 0: seed the fused-input carry with the (already gathered) embedding rows.
    @pl.when(layer == 0)
    def _():
        xh_scr[:, :IN_pad] = x0_ref[...]

    # This layer's recurrent state goes in the tail of the fused input.
    xh_scr[:, IN_pad:] = h0_ref[...].astype(jnp.bfloat16)

    # ONE fused matmul per layer: [x | h_prev] @ [W_ih; W_hh] + (b_ih + b_hh).
    gates = (jnp.dot(xh_scr[...], w_ref[...], preferred_element_type=jnp.float32)
             + bias_ref[...])                    # (B_pad, 4*H_pad) f32

    # Gate split is 128-lane aligned (each gate owns a full H_pad chunk).
    i_g = jax.nn.sigmoid(gates[:, 0 * H_pad:1 * H_pad])
    f_g = jax.nn.sigmoid(gates[:, 1 * H_pad:2 * H_pad])
    g_g = jnp.tanh(gates[:, 2 * H_pad:3 * H_pad])
    o_g = jax.nn.sigmoid(gates[:, 3 * H_pad:4 * H_pad])
    # TODO(synk): for H_pad >= ~2048, split into per-gate matmuls to cap live f32 vregs.

    c_new = f_g * c0_ref[...] + i_g * g_g
    h_new = o_g * jnp.tanh(c_new)

    h_out_ref[...] = h_new
    c_out_ref[...] = c_new
    # Feed the next layer via the bf16 VMEM carry. Columns >= H_pad keep stale
    # values, but the padded W_ih rows for those columns are zero, so inert.
    xh_scr[:, :H_pad] = h_new.astype(jnp.bfloat16)


def _fc_kernel(h_ref, w_ref, b_ref, o_ref):
    o_ref[...] = (jnp.dot(h_ref[...].astype(jnp.bfloat16), w_ref[...],
                          preferred_element_type=jnp.float32) + b_ref[...])


# ---------------------------------------------------------------------------
# pallas_call wrappers
# ---------------------------------------------------------------------------

def _lstm_stack(x0, h0, c0, W, Bg, *, B_pad, H_pad, IN_pad, G_pad, L):
    INH_pad = IN_pad + H_pad
    est = (2 * B_pad * IN_pad * 2            # x0 (bf16, double-buffered)
           + 4 * 2 * B_pad * H_pad * 4       # h0/c0 in + h/c out (f32, double-buffered)
           + 2 * INH_pad * G_pad * 2         # fused weight (bf16, double-buffered)
           + 2 * G_pad * 4                   # bias
           + B_pad * INH_pad * 2)            # xh carry scratch
    grid_spec = pltpu.PrefetchScalarGridSpec(
        num_scalar_prefetch=0,
        grid=(L,),
        in_specs=[
            pl.BlockSpec((B_pad, IN_pad), lambda l: (0, 0)),            # embedded x0 (resident)
            pl.BlockSpec((None, B_pad, H_pad), lambda l: (l, 0, 0)),    # h0[layer]
            pl.BlockSpec((None, B_pad, H_pad), lambda l: (l, 0, 0)),    # c0[layer]
            pl.BlockSpec((None, INH_pad, G_pad), lambda l: (l, 0, 0)),  # [W_ih; W_hh][layer]
            pl.BlockSpec((None, 1, G_pad), lambda l: (l, 0, 0)),        # bias[layer]
        ],
        out_specs=(
            pl.BlockSpec((None, B_pad, H_pad), lambda l: (l, 0, 0)),    # new_h[layer]
            pl.BlockSpec((None, B_pad, H_pad), lambda l: (l, 0, 0)),    # new_c[layer]
        ),
        scratch_shapes=[
            pltpu.VMEM((B_pad, INH_pad), jnp.bfloat16),   # fused [x | h_prev] carry
        ],
    )
    return pl.pallas_call(
        _lstm_stack_kernel,
        out_shape=(jax.ShapeDtypeStruct((L, B_pad, H_pad), jnp.float32),
                   jax.ShapeDtypeStruct((L, B_pad, H_pad), jnp.float32)),
        grid_spec=grid_spec,
        compiler_params=pltpu.CompilerParams(
            dimension_semantics=("arbitrary",),
            vmem_limit_bytes=_vmem_limit(est)),
    )(x0, h0, c0, W, Bg)


def _fc_vocab_tiled(new_h_pad, fc_w_t, fc_b, *, tn):
    L, B_pad, H_pad = new_h_pad.shape
    V_pad = fc_w_t.shape[1]
    est = (2 * B_pad * H_pad * 4             # top-layer hidden
           + 2 * H_pad * tn * 2              # weight tile (bf16, double-buffered)
           + 2 * tn * 4                      # bias tile
           + 2 * B_pad * tn * 4)             # output tile
    # TODO(synk): int8 (v5e/v6e) or fp8 (v7x) fc weights would halve the dominant HBM stream.
    return pl.pallas_call(
        _fc_kernel,
        out_shape=jax.ShapeDtypeStruct((B_pad, V_pad), jnp.float32),
        grid=(V_pad // tn,),
        in_specs=[
            pl.BlockSpec((None, B_pad, H_pad), lambda j: (L - 1, 0, 0)),  # top-layer hidden only
            pl.BlockSpec((H_pad, tn), lambda j: (0, j)),                  # weight vocab tile
            pl.BlockSpec((1, tn), lambda j: (0, j)),                      # bias vocab tile
        ],
        out_specs=pl.BlockSpec((B_pad, tn), lambda j: (0, j)),            # lane-dense output
        compiler_params=pltpu.CompilerParams(
            dimension_semantics=("parallel",),
            vmem_limit_bytes=_vmem_limit(est)),
    )(new_h_pad, fc_w_t, fc_b)


# ---------------------------------------------------------------------------
# Parameters: PyTorch-layout init + one-time kernel-layout preparation
# ---------------------------------------------------------------------------

def init_decoder_params(key, output_dim, emb_dim, hid_dim, n_layers):
    keys = jax.random.split(key, 3 + 4 * n_layers)
    k = 0
    params = {}
    params["embedding"] = 0.1 * jax.random.normal(
        keys[k], (output_dim, emb_dim), jnp.float32); k += 1
    layers = []
    for l in range(n_layers):
        in_dim = emb_dim if l == 0 else hid_dim
        w_ih = 0.1 * jax.random.normal(keys[k], (4 * hid_dim, in_dim), jnp.float32); k += 1
        w_hh = 0.1 * jax.random.normal(keys[k], (4 * hid_dim, hid_dim), jnp.float32); k += 1
        b_ih = 0.1 * jax.random.normal(keys[k], (4 * hid_dim,), jnp.float32); k += 1
        b_hh = 0.1 * jax.random.normal(keys[k], (4 * hid_dim,), jnp.float32); k += 1
        layers.append(dict(w_ih=w_ih, w_hh=w_hh, b_ih=b_ih, b_hh=b_hh))
    params["lstm"] = layers
    params["fc_w"] = 0.1 * jax.random.normal(keys[k], (output_dim, hid_dim), jnp.float32); k += 1
    params["fc_b"] = 0.1 * jax.random.normal(keys[k], (output_dim,), jnp.float32)
    return params


def prepare_decoder_params(params, *, fc_tile=None):
    """One-time: transpose, gate-align, pre-sum biases, fuse [W_ih;W_hh], pad, cast to bf16."""
    emb = params["embedding"]                       # (V, E)
    V, E = emb.shape
    layers = params["lstm"]
    L = len(layers)
    H = layers[0]["w_hh"].shape[1]
    H_pad = _round_up(H, LANE)
    IN_pad = _round_up(max(E, H), LANE)
    G_pad = 4 * H_pad
    INH_pad = IN_pad + H_pad
    if fc_tile is None:
        # Large, lane-dense vocab tiles (HBM streaming efficiency) without over-padding tiny vocabs.
        fc_tile = max(LANE, min(1024, _round_up(V, LANE)))
    V_pad = _round_up(V, fc_tile)

    # Embedding in bf16 (it enters the MXU as bf16 anyway); columns padded to IN_pad.
    emb_p = _pad_to(emb, (V, IN_pad)).astype(jnp.bfloat16)

    w_l, b_l = [], []
    for layer in layers:
        w_ih_t = _pad_gate_cols(layer["w_ih"].T, H, H_pad)    # (in_dim, G_pad)
        w_hh_t = _pad_gate_cols(layer["w_hh"].T, H, H_pad)    # (H, G_pad)
        w_comb = jnp.zeros((INH_pad, G_pad), jnp.float32)
        w_comb = w_comb.at[:w_ih_t.shape[0], :].set(w_ih_t)   # rows [0, in_dim)
        w_comb = w_comb.at[IN_pad:IN_pad + H, :].set(w_hh_t)  # rows [IN_pad, IN_pad+H)
        w_l.append(w_comb)
        b_l.append(_pad_gate_cols((layer["b_ih"] + layer["b_hh"]).reshape(1, -1), H, H_pad))
    W = jnp.stack(w_l).astype(jnp.bfloat16)         # (L, INH_pad, G_pad)
    B_g = jnp.stack(b_l).astype(jnp.float32)        # (L, 1, G_pad)

    fc_w_t = _pad_to(params["fc_w"].T, (H_pad, V_pad)).astype(jnp.bfloat16)
    fc_b = _pad_to(params["fc_b"].reshape(1, -1), (1, V_pad)).astype(jnp.float32)

    dims = dict(V=V, E=E, H=H, L=L, H_pad=H_pad, IN_pad=IN_pad, G_pad=G_pad,
                INH_pad=INH_pad, V_pad=V_pad, fc_tile=fc_tile)
    return dict(emb=emb_p, W=W, B=B_g, fc_w_t=fc_w_t, fc_b=fc_b, dims=dims)


# ---------------------------------------------------------------------------
# Decoder forward (matches the PyTorch module, eval mode)
# ---------------------------------------------------------------------------

def decoder_forward(prepped, inp, hidden, cell):
    """inp: (B, output_dim) logits; hidden, cell: (n_layers, B, hid_dim)."""
    d = prepped["dims"]
    B = inp.shape[0]
    B_pad = _round_up(B, SUBLANE)
    L, H, H_pad, IN_pad = d["L"], d["H"], d["H_pad"], d["IN_pad"]

    # input.unsqueeze(0).argmax(2) -> token ids; embedding gather done here (XLA)
    # so the kernel receives a single resident VMEM block instead of per-row DMAs.
    idx = jnp.argmax(inp, axis=-1).astype(jnp.int32)
    x0 = jnp.take(prepped["emb"], idx, axis=0)              # (B, IN_pad) bf16
    x0 = _pad_to(x0, (B_pad, IN_pad))
    h0 = _pad_to(hidden.astype(jnp.float32), (L, B_pad, H_pad))
    c0 = _pad_to(cell.astype(jnp.float32), (L, B_pad, H_pad))

    # TODO(synk): nn.Dropout omitted — eval-mode (inference) semantics, identity.
    new_h, new_c = _lstm_stack(x0, h0, c0, prepped["W"], prepped["B"],
                               B_pad=B_pad, H_pad=H_pad, IN_pad=IN_pad,
                               G_pad=d["G_pad"], L=L)

    # TODO(synk): for single-token decode, fusing the fc into the LSTM call would remove
    # one launch + the new_h HBM round-trip, at the cost of v7x 2-TC vocab sharding.
    pred_pad = _fc_vocab_tiled(new_h, prepped["fc_w_t"], prepped["fc_b"], tn=d["fc_tile"])

    prediction = pred_pad[:B, :d["V"]]
    return prediction, new_h[:, :B, :H], new_c[:, :B, :H]


# Pure-JAX f32 reference (PyTorch semantics) for a sanity check
def decoder_forward_ref(params, inp, hidden, cell):
    idx = jnp.argmax(inp, axis=-1)
    x = params["embedding"][idx]
    H = hidden.shape[-1]
    new_h, new_c = [], []
    for l, layer in enumerate(params["lstm"]):
        gates = (x @ layer["w_ih"].T + hidden[l] @ layer["w_hh"].T
                 + layer["b_ih"] + layer["b_hh"])
        i = jax.nn.sigmoid(gates[:, 0 * H:1 * H])
        f = jax.nn.sigmoid(gates[:, 1 * H:2 * H])
        g = jnp.tanh(gates[:, 2 * H:3 * H])
        o = jax.nn.sigmoid(gates[:, 3 * H:4 * H])
        c_l = f * cell[l] + i * g
        h_l = o * jnp.tanh(c_l)
        new_h.append(h_l)
        new_c.append(c_l)
        x = h_l
    pred = x @ params["fc_w"].T + params["fc_b"]
    return pred, jnp.stack(new_h), jnp.stack(new_c)


if __name__ == "__main__":
    # Small, deliberately unaligned shapes to exercise the padding paths
    # (vocab 200 -> 256-wide fc tile, hid 96 -> 128, emb 48 -> 128, batch 5 -> 8).
    output_dim, emb_dim, hid_dim, n_layers = 200, 48, 96, 2
    batch = 5

    key = jax.random.PRNGKey(0)
    kp, ki, kh, kc = jax.random.split(key, 4)

    params = init_decoder_params(kp, output_dim, emb_dim, hid_dim, n_layers)
    prepped = prepare_decoder_params(params)

    inp = jax.random.normal(ki, (batch, output_dim), jnp.float32)
    hidden = jax.random.normal(kh, (n_layers, batch, hid_dim), jnp.float32)
    cell = jax.random.normal(kc, (n_layers, batch, hid_dim), jnp.float32)

    step = jax.jit(lambda i_, h_, c_: decoder_forward(prepped, i_, h_, c_))
    pred, h_new, c_new = step(inp, hidden, cell)
    jax.block_until_ready((pred, h_new, c_new))

    pred_r, h_r, c_r = decoder_forward_ref(params, inp, hidden, cell)

    assert pred.shape == (batch, output_dim)
    assert h_new.shape == (n_layers, batch, hid_dim)
    assert c_new.shape == (n_layers, batch, hid_dim)
    # bf16 weights / bf16 MXU inputs -> loosened tolerance vs the f32 reference.
    assert jnp.allclose(pred, pred_r, atol=2e-2), float(jnp.max(jnp.abs(pred - pred_r)))
    assert jnp.allclose(h_new, h_r, atol=2e-2), float(jnp.max(jnp.abs(h_new - h_r)))
    assert jnp.allclose(c_new, c_r, atol=2e-2), float(jnp.max(jnp.abs(c_new - c_r)))

    print("KERNEL_OK")
</pallas_src>

<mosaic_0001>
module attributes {stable_mosaic.version = 11 : i64} {
  func.func @_fc_kernel(%arg0: i32, %arg1: memref<1x8x128xf32, #tpu.memory_space<vmem>>, %arg2: memref<128x256xbf16, #tpu.memory_space<vmem>>, %arg3: memref<1x256xf32, #tpu.memory_space<vmem>>, %arg4: memref<8x256xf32, #tpu.memory_space<vmem>>) attributes {dimension_semantics = [#tpu.dimension_semantics<parallel>], iteration_bounds = array<i64: 1>, scalar_prefetch = 0 : i64, scratch_operands = 0 : i64, tpu.core_type = #tpu.core_type<tc>, window_params = [{transform_indices = @transform_0, window_bounds = array<i64: 1, 8, 128>}, {transform_indices = @transform_1, window_bounds = array<i64: 128, 256>}, {transform_indices = @transform_2, window_bounds = array<i64: 1, 256>}, {transform_indices = @transform_3, window_bounds = array<i64: 8, 256>}]} {
    %c0 = arith.constant 0 : index
    %c0_0 = arith.constant 0 : index
    %c0_1 = arith.constant 0 : index
    %0 = vector.load %arg1[%c0, %c0_0, %c0_1] : memref<1x8x128xf32, #tpu.memory_space<vmem>>, vector<1x8x128xf32>
    %1 = vector.shape_cast %0 : vector<1x8x128xf32> to vector<8x128xf32>
    %2 = arith.truncf %1 : vector<8x128xf32> to vector<8x128xbf16>
    %c0_2 = arith.constant 0 : index
    %c0_3 = arith.constant 0 : index
    %3 = vector.load %arg2[%c0_2, %c0_3] : memref<128x256xbf16, #tpu.memory_space<vmem>>, vector<128x256xbf16>
    %cst = arith.constant dense<0.000000e+00> : vector<8x256xf32>
    %4 = tpu.matmul %2, %3, %cst {dimension_numbers = #tpu.dot_dimension_numbers<[1], [0], [0], [1], [0, 0, 1, 1], [], []>} : vector<8x128xbf16>, vector<128x256xbf16>, vector<8x256xf32> -> vector<8x256xf32>
    %c0_4 = arith.constant 0 : index
    %c0_5 = arith.constant 0 : index
    %5 = vector.load %arg3[%c0_4, %c0_5] : memref<1x256xf32, #tpu.memory_space<vmem>>, vector<1x256xf32>
    %6 = vector.broadcast %5 : vector<1x256xf32> to vector<8x256xf32>
    %7 = arith.addf %4, %6 : vector<8x256xf32>
    %c0_6 = arith.constant 0 : index
    %c0_7 = arith.constant 0 : index
    %8 = vector.load %arg4[%c0_6, %c0_7] : memref<8x256xf32, #tpu.memory_space<vmem>>, vector<8x256xf32>
    tpu.vector_store %arg4[%c0_6, %c0_7], %7 {strides = array<i32>} : memref<8x256xf32, #tpu.memory_space<vmem>>, vector<8x256xf32>,
    return
  }
  func.func @transform_0(%arg0: i32) -> (i32, i32, i32) {
    %c1_i32 = arith.constant 1 : i32
    %c0_i32 = arith.constant 0 : i32
    %c0_i32_0 = arith.constant 0 : i32
    %c0_i32_1 = arith.constant 0 : i32
    return %c1_i32, %c0_i32, %c0_i32_0 : i32, i32, i32
  }
  func.func @transform_1(%arg0: i32) -> (i32, i32) {
    %c0_i32 = arith.constant 0 : i32
    %c0_i32_0 = arith.constant 0 : i32
    return %c0_i32, %arg0 : i32, i32
  }
  func.func @transform_2(%arg0: i32) -> (i32, i32) {
    %c0_i32 = arith.constant 0 : i32
    %c0_i32_0 = arith.constant 0 : i32
    return %c0_i32, %arg0 : i32, i32
  }
  func.func @transform_3(%arg0: i32) -> (i32, i32) {
    %c0_i32 = arith.constant 0 : i32
    %c0_i32_0 = arith.constant 0 : i32
    return %c0_i32, %arg0 : i32, i32
  }
}

module attributes {stable_mosaic.version = 11 : i64} {
  func.func @_lstm_stack_kernel(%arg0: i32, %arg1: memref<8x128xbf16, #tpu.memory_space<vmem>>, %arg2: memref<1x8x128xf32, #tpu.memory_space<vmem>>, %arg3: memref<1x8x128xf32, #tpu.memory_space<vmem>>, %arg4: memref<1x256x512xbf16, #tpu.memory_space<vmem>>, %arg5: memref<1x1x512xf32, #tpu.memory_space<vmem>>, %arg6: memref<1x8x128xf32, #tpu.memory_space<vmem>>, %arg7: memref<1x8x128xf32, #tpu.memory_space<vmem>>, %arg8: memref<8x256xbf16, #tpu.memory_space<vmem>>) attributes {dimension_semantics = [#tpu.dimension_semantics<arbitrary>], iteration_bounds = array<i64: 2>, scalar_prefetch = 0 : i64, scratch_operands = 1 : i64, tpu.core_type = #tpu.core_type<tc>, window_params = [{pipeline_mode = #tpu.pipeline_mode<synchronous>, transform_indices = @transform_0, window_bounds = array<i64: 8, 128>}, {transform_indices = @transform_1, window_bounds = array<i64: 1, 8, 128>}, {transform_indices = @transform_2, window_bounds = array<i64: 1, 8, 128>}, {transform_indices = @transform_3, window_bounds = array<i64: 1, 256, 512>}, {transform_indices = @transform_4, window_bounds = array<i64: 1, 1, 512>}, {transform_indices = @transform_5, window_bounds = array<i64: 1, 8, 128>}, {transform_indices = @transform_6, window_bounds = array<i64: 1, 8, 128>}]} {
    %c0_i32 = arith.constant 0 : i32
    %0 = arith.cmpi eq, %arg0, %c0_i32 : i32
    %1 = arith.extui %0 : i1 to i32
    %c0_i32_0 = arith.constant 0 : i32
    %2 = arith.cmpi ne, %1, %c0_i32_0 : i32
    scf.if %2 {
      %c0_26 = arith.constant 0 : index
      %c0_27 = arith.constant 0 : index
      %50 = vector.load %arg1[%c0_26, %c0_27] : memref<8x128xbf16, #tpu.memory_space<vmem>>, vector<8x128xbf16>
      %c0_28 = arith.constant 0 : index
      %c0_29 = arith.constant 0 : index
      %51 = vector.load %arg8[%c0_28, %c0_29] : memref<8x256xbf16, #tpu.memory_space<vmem>>, vector<8x128xbf16>
      tpu.vector_store %arg8[%c0_28, %c0_29], %50 {strides = array<i32>} : memref<8x256xbf16, #tpu.memory_space<vmem>>, vector<8x128xbf16>,
    } else {
    }
    %c0 = arith.constant 0 : index
    %c0_1 = arith.constant 0 : index
    %c0_2 = arith.constant 0 : index
    %3 = vector.load %arg2[%c0, %c0_1, %c0_2] : memref<1x8x128xf32, #tpu.memory_space<vmem>>, vector<1x8x128xf32>
    %4 = vector.shape_cast %3 : vector<1x8x128xf32> to vector<8x128xf32>
    %5 = arith.truncf %4 : vector<8x128xf32> to vector<8x128xbf16>
    %c0_3 = arith.constant 0 : index
    %c128 = arith.constant 128 : index
    %6 = vector.load %arg8[%c0_3, %c128] : memref<8x256xbf16, #tpu.memory_space<vmem>>, vector<8x128xbf16>
    tpu.vector_store %arg8[%c0_3, %c128], %5 {strides = array<i32>} : memref<8x256xbf16, #tpu.memory_space<vmem>>, vector<8x128xbf16>,
    %c0_4 = arith.constant 0 : index
    %c0_5 = arith.constant 0 : index
    %7 = vector.load %arg8[%c0_4, %c0_5] : memref<8x256xbf16, #tpu.memory_space<vmem>>, vector<8x256xbf16>
    %c0_6 = arith.constant 0 : index
    %c0_7 = arith.constant 0 : index
    %c0_8 = arith.constant 0 : index
    %8 = vector.load %arg4[%c0_6, %c0_7, %c0_8] : memref<1x256x512xbf16, #tpu.memory_space<vmem>>, vector<1x256x512xbf16>
    %9 = vector.shape_cast %8 : vector<1x256x512xbf16> to vector<256x512xbf16>
    %cst = arith.constant dense<0.000000e+00> : vector<8x512xf32>
    %10 = tpu.matmul %7, %9, %cst {dimension_numbers = #tpu.dot_dimension_numbers<[1], [0], [0], [1], [0, 0, 1, 1], [], []>} : vector<8x256xbf16>, vector<256x512xbf16>, vector<8x512xf32> -> vector<8x512xf32>
    %c0_9 = arith.constant 0 : index
    %c0_10 = arith.constant 0 : index
    %c0_11 = arith.constant 0 : index
    %11 = vector.load %arg5[%c0_9, %c0_10, %c0_11] : memref<1x1x512xf32, #tpu.memory_space<vmem>>, vector<1x1x512xf32>
    %12 = vector.shape_cast %11 : vector<1x1x512xf32> to vector<1x512xf32>
    %13 = vector.broadcast %12 : vector<1x512xf32> to vector<8x512xf32>
    %14 = arith.addf %10, %13 : vector<8x512xf32>
    %15 = vector.extract_strided_slice %14 {offsets = [0, 0], sizes = [8, 128], strides = [1, 1]} : vector<8x512xf32> to vector<8x128xf32>
    %16 = arith.negf %15 : vector<8x128xf32>
    %17 = math.exp %16 : vector<8x128xf32>
    %cst_12 = arith.constant 1.000000e+00 : f32
    %18 = vector.broadcast %cst_12 : f32 to vector<8x128xf32>
    %19 = arith.addf %18, %17 : vector<8x128xf32>
    %20 = arith.divf %18, %19 : vector<8x128xf32>
    %21 = vector.extract_strided_slice %14 {offsets = [0, 128], sizes = [8, 128], strides = [1, 1]} : vector<8x512xf32> to vector<8x128xf32>
    %22 = arith.negf %21 : vector<8x128xf32>
    %23 = math.exp %22 : vector<8x128xf32>
    %cst_13 = arith.constant 1.000000e+00 : f32
    %24 = vector.broadcast %cst_13 : f32 to vector<8x128xf32>
    %25 = arith.addf %24, %23 : vector<8x128xf32>
    %26 = arith.divf %24, %25 : vector<8x128xf32>
    %27 = vector.extract_strided_slice %14 {offsets = [0, 256], sizes = [8, 128], strides = [1, 1]} : vector<8x512xf32> to vector<8x128xf32>
    %28 = math.tanh %27 : vector<8x128xf32>
    %29 = vector.extract_strided_slice %14 {offsets = [0, 384], sizes = [8, 128], strides = [1, 1]} : vector<8x512xf32> to vector<8x128xf32>
    %30 = arith.negf %29 : vector<8x128xf32>
    %31 = math.exp %30 : vector<8x128xf32>
    %cst_14 = arith.constant 1.000000e+00 : f32
    %32 = vector.broadcast %cst_14 : f32 to vector<8x128xf32>
    %33 = arith.addf %32, %31 : vector<8x128xf32>
    %34 = arith.divf %32, %33 : vector<8x128xf32>
    %c0_15 = arith.constant 0 : index
    %c0_16 = arith.constant 0 : index
    %c0_17 = arith.constant 0 : index
    %35 = vector.load %arg3[%c0_15, %c0_16, %c0_17] : memref<1x8x128xf32, #tpu.memory_space<vmem>>, vector<1x8x128xf32>
    %36 = vector.shape_cast %35 : vector<1x8x128xf32> to vector<8x128xf32>
    %37 = arith.mulf %26, %36 : vector<8x128xf32>
    %38 = arith.mulf %20, %28 : vector<8x128xf32>
    %39 = arith.addf %37, %38 : vector<8x128xf32>
    %40 = math.tanh %39 : vector<8x128xf32>
    %41 = arith.mulf %34, %40 : vector<8x128xf32>
    %c0_18 = arith.constant 0 : index
    %c0_19 = arith.constant 0 : index
    %c0_20 = arith.constant 0 : index
    %42 = vector.load %arg6[%c0_18, %c0_19, %c0_20] : memref<1x8x128xf32, #tpu.memory_space<vmem>>, vector<1x8x128xf32>
    %43 = vector.shape_cast %42 : vector<1x8x128xf32> to vector<8x128xf32>
    %44 = vector.shape_cast %41 : vector<8x128xf32> to vector<1x8x128xf32>
    tpu.vector_store %arg6[%c0_18, %c0_19, %c0_20], %44 {strides = array<i32>} : memref<1x8x128xf32, #tpu.memory_space<vmem>>, vector<1x8x128xf32>,
    %c0_21 = arith.constant 0 : index
    %c0_22 = arith.constant 0 : index
    %c0_23 = arith.constant 0 : index
    %45 = vector.load %arg7[%c0_21, %c0_22, %c0_23] : memref<1x8x128xf32, #tpu.memory_space<vmem>>, vector<1x8x128xf32>
    %46 = vector.shape_cast %45 : vector<1x8x128xf32> to vector<8x128xf32>
    %47 = vector.shape_cast %39 : vector<8x128xf32> to vector<1x8x128xf32>
    tpu.vector_store %arg7[%c0_21, %c0_22, %c0_23], %47 {strides = array<i32>} : memref<1x8x128xf32, #tpu.memory_space<vmem>>, vector<1x8x128xf32>,
    %48 = arith.truncf %41 : vector<8x128xf32> to vector<8x128xbf16>
    %c0_24 = arith.constant 0 : index
    %c0_25 = arith.constant 0 : index
    %49 = vector.load %arg8[%c0_24, %c0_25] : memref<8x256xbf16, #tpu.memory_space<vmem>>, vector<8x128xbf16>
    tpu.vector_store %arg8[%c0_24, %c0_25], %48 {strides = array<i32>} : memref<8x256xbf16, #tpu.memory_space<vmem>>, vector<8x128xbf16>,
    return
  }
  func.func @transform_0(%arg0: i32) -> (i32, i32) {
    %c0_i32 = arith.constant 0 : i32
    %c0_i32_0 = arith.constant 0 : i32
    %c0_i32_1 = arith.constant 0 : i32
    return %c0_i32, %c0_i32_0 : i32, i32
  }
  func.func @transform_1(%arg0: i32) -> (i32, i32, i32) {
    %c0_i32 = arith.constant 0 : i32
    %c0_i32_0 = arith.constant 0 : i32
    %c0_i32_1 = arith.constant 0 : i32
    return %arg0, %c0_i32, %c0_i32_0 : i32, i32, i32
  }
  func.func @transform_2(%arg0: i32) -> (i32, i32, i32) {
    %c0_i32 = arith.constant 0 : i32
    %c0_i32_0 = arith.constant 0 : i32
    %c0_i32_1 = arith.constant 0 : i32
    return %arg0, %c0_i32, %c0_i32_0 : i32, i32, i32
  }
  func.func @transform_3(%arg0: i32) -> (i32, i32, i32) {
    %c0_i32 = arith.constant 0 : i32
    %c0_i32_0 = arith.constant 0 : i32
    %c0_i32_1 = arith.constant 0 : i32
    return %arg0, %c0_i32, %c0_i32_0 : i32, i32, i32
  }
  func.func @transform_4(%arg0: i32) -> (i32, i32, i32) {
    %c0_i32 = arith.constant 0 : i32
    %c0_i32_0 = arith.constant 0 : i32
    %c0_i32_1 = arith.constant 0 : i32
    return %arg0, %c0_i32, %c0_i32_0 : i32, i32, i32
  }
  func.func @transform_5(%arg0: i32) -> (i32, i32, i32) {
    %c0_i32 = arith.constant 0 : i32
    %c0_i32_0 = arith.constant 0 : i32
    %c0_i32_1 = arith.constant 0 : i32
    return %arg0, %c0_i32, %c0_i32_0 : i32, i32, i32
  }
  func.func @transform_6(%arg0: i32) -> (i32, i32, i32) {
    %c0_i32 = arith.constant 0 : i32
    %c0_i32_0 = arith.constant 0 : i32
    %c0_i32_1 = arith.constant 0 : i32
    return %arg0, %c0_i32, %c0_i32_0 : i32, i32, i32
  }
}

</mosaic_0001>

<bundles_post_ra>
// kernel: _lambda_.3
= control target key start
LH: loop header
LB: loop body
LE: loop exit
PB: predicated region body
PF: predicated region fallthrough
CT: control target
= control target key end

     0   :  { %v253_v2 = vmov 0   ;;  %s341_s0 = inlined_call_operand.vmem [shape: f32[2,8,128], index: 0, kind: input, shape index: {}]   ;;  %s342_s1 = inlined_call_operand.vmem [shape: bf16[128,256], index: 1, kind: input, shape index: {}]   ;;  %s343_s2 = inlined_call_operand.vmem [shape: f32[1,256], index: 2, kind: input, shape index: {}]   ;;  %s344_s3 = inlined_call_operand.hbm [shape: f32[8,256], index: 3, kind: output, shape index: {}]  }
   0x1   :  { %v205_v0 = vld [vmem:[%s342_s1 + $0x4] ss:$8 sps:$4 sm:$0xff]   ;;  %v207_v1 = vld [vmem:[%s342_s1] ss:$8 sps:$4 sm:$0xff]   ;;  %161 = vmatprep.mubr.bf16.mxu0 %v253_v2  ;;  %v208_v3 = vld [vmem:[%s342_s1 + $0x14] ss:$8 sps:$4 sm:$0xff]  }
   0x2   :  { %129 = vmatprep.subr.bf16.mxu0 %v205_v0  ;;  %v210_v4 = vld [vmem:[%s342_s1 + $0x10] ss:$8 sps:$4 sm:$0xff]   ;;  %v211_v5 = vld [vmem:[%s342_s1 + $0x24] ss:$8 sps:$4 sm:$0xff]   ;;  %v213_v6 = vld [vmem:[%s342_s1 + $0x20] ss:$8 sps:$4 sm:$0xff]  }
   0x3   :  { %130 = vmatpush1.bf16.msra.mxu0 %v207_v1  ;;  %v214_v7 = vld [vmem:[%s342_s1 + $0x34] ss:$8 sps:$4 sm:$0xff]   ;;  %v216_v8 = vld [vmem:[%s342_s1 + $0x30] ss:$8 sps:$4 sm:$0xff]  }
   0x4   :  { %131 = vmatprep.subr.bf16.mxu0 %v208_v3 }
   0x7   :  { %132 = vmatpush1.bf16.msra.mxu0 %v210_v4 }
   0x8   :  { %133 = vmatprep.subr.bf16.mxu0 %v211_v5 }
   0xb   :  { %134 = vmatpush1.bf16.msra.mxu0 %v213_v6 }
   0xc   :  { %8 = vsyncpa [#allocation3], 0  ;;  %135 = vmatprep.subr.bf16.mxu0 %v214_v7  ;;  %v217_v9 = vld [vmem:[%s342_s1 + $0x44] ss:$8 sps:$4 sm:$0xff]   ;;  %v219_v10 = vld [vmem:[%s342_s1 + $0x40] ss:$8 sps:$4 sm:$0xff]   ;;  %v39_v19 = vlaneseq }
   0xd   :  { %v220_v11 = vld [vmem:[%s342_s1 + $0x54] ss:$8 sps:$4 sm:$0xff]   ;;  %v222_v12 = vld [vmem:[%s342_s1 + $0x50] ss:$8 sps:$4 sm:$0xff]   ;;  %v223_v13 = vld [vmem:[%s342_s1 + $0x64] ss:$8 sps:$4 sm:$0xff]  }
   0xe   :  { %v225_v14 = vld [vmem:[%s342_s1 + $0x60] ss:$8 sps:$4 sm:$0xff]   ;;  %v226_v15 = vld [vmem:[%s342_s1 + $0x74] ss:$8 sps:$4 sm:$0xff]   ;;  %v228_v16 = vld [vmem:[%s342_s1 + $0x70] ss:$8 sps:$4 sm:$0xff]  }
   0xf   :  { %136 = vmatpush1.bf16.msra.mxu0 %v216_v8  ;;  %v186_v17 = vld [vmem:[%s341_s0 + $0x8] sm:$0xff]  ;;  %v40_v20 = vshrl.u32 %v39_v19, 7  ;;  %v37_v22 = vld [vmem:[%s343_s2] sm:$0x3]  ;;  %s254_s21 = smov [#allocation2]  }
  0x10   :  { %137 = vmatprep.subr.bf16.mxu0 %v217_v9  ;;  %v20_v18 = vpack.c.bf16 %v186_v17, %v186_v17  ;;  %s178_s1 = sshll.u32 %s254_s21, 4  ;;  %s179_s1 = int_to_ptr.vmem [resolvable:$true] %s178_s1 }
  0x11   :  { %v41_v21 = vsub.s32 0, %v40_v20  ;;  %v45_v23 = vsub.s32 1, %v40_v20  ;;  %s229_s0 = scalar_lea.vmem %s179_s1, 256  ;;  %p234_p1 = scmp.lt.s32.totalorder %s179_s1, %s179_s1 }
  0x12   :  { %p230_p0 = scmp.ne.s32.totalorder %s179_s1, %s229_s0  ;;  %p235_p2 = scmp.lt.s32.totalorder %s229_s0, %s229_s0 }
  0x13   :  { %138 = vmatpush1.bf16.msra.mxu0 %v219_v10  ;;  %v42_v24 = vrot.slane %v37_v22, %v41_v21  ;;  %v46_v25 = vrot.slane %v37_v22, %v45_v23 }
  0x14   :  { %139 = vmatprep.subr.bf16.mxu0 %v220_v11  ;;  %p236_p3 = por %p235_p2, %p234_p1 }
  0x16   :  { %p237_p4 = pnand %p236_p3, %p230_p0 }
  0x17   :  { %140 = vmatpush1.bf16.msra.mxu0 %v222_v12 }
  0x18   :  { %141 = vmatprep.subr.bf16.mxu0 %v223_v13 }
  0x1b   :  { %142 = vmatpush1.bf16.msra.mxu0 %v225_v14 }
  0x1c   :  { %143 = vmatprep.subr.bf16.mxu0 %v226_v15 }
  0x1f   :  { %144 = vmatpush1.bf16.msra.mxu0 %v228_v16 }
  0x22   :  { %162 = vmatmul.mubr.bf16.vlgmr.msra.gmra.mrb[0].mxu0 %v20_v18 }
  0xf5   :  { %v163_v26 = vpop.f32.mrb[0].mxu0 }
  0xf6   :  { %v164_v27 = vadd.f32 %v163_v26, %v42_v24  ;;  %v165_v28 = vpop.f32.mrb[1].mxu0 }
  0xf7   :  { %v166_v29 = vadd.f32 %v165_v28, %v46_v25  ;;  %v167_v30 = vpop.f32.mrb[2].mxu0 }
  0xf8   :  { %170 = vst [vmem:[#allocation2] sm:$0xff] %v164_v27  ;;  %v168_v31 = vpop.f32.mrb[3].mxu0 }
  0xf9   :  { %171 = vst [vmem:[#allocation2 + $0x8] sm:$0xff] %v166_v29 }
  0xfa   :  { %240 = shalt.err (!%p237_p4)
}
  0xfb   :  { %s241_s23 = scalar_lea.hbm %s344_s3, 256 }
  0xfc   :  { %p242_p5 = scmp.ne.s32.totalorder %s344_s3, %s241_s23  ;;  %p245_p6 = scmp.lt.u32.totalorder %s241_s23, %s344_s3 }
  0xfe   :  { %p247_p7 = pnand %p245_p6, %p242_p5 }
 0x100   :  { %250 = shalt.err (!%p247_p7)
}
 0x101   :  { %181 = dma.vmem_to_hbm [thread:$0]  %s179_s1, 256, %s344_s3, [#allocation3]  }
 0x102   :  { %251 = dma.done.wait [#allocation3], 256  }
 0x103   :  { %252 = vsyncadd [#allocation3], 4294967040 }
 0x104   :  { %185 = vsyncpa [#allocation3], 1 }

// kernel: _lambda_.2
= control target key start
LH: loop header
LB: loop body
LE: loop exit
PB: predicated region body
PF: predicated region fallthrough
CT: control target
= control target key end

     0   :  { %s1216_s21 = smov 0   ;;  %s1343_s0 = inlined_call_operand.vmem [shape: bf16[8,128], index: 0, kind: input, shape index: {}]   ;;  %s1344_s1 = inlined_call_operand.vmem [shape: f32[2,8,128], index: 1, kind: input, shape index: {}]   ;;  %s1345_s2 = inlined_call_operand.vmem [shape: f32[2,8,128], index: 2, kind: input, shape index: {}]   ;;  %s1346_s3 = inlined_call_operand.vmem [shape: bf16[2,256,512], index: 3, kind: input, shape index: {}]   ;;  %s1347_s4 = inlined_call_operand.vmem [shape: f32[2,1,512], index: 4, kind: input, shape index: {}]   ;;  %s1348_s5 = inlined_call_operand.vmem [shape: f32[2,8,128], index: 5, kind: output, shape index: {0}]   ;;  %s1349_s6 = inlined_call_operand.vmem [shape: f32[2,8,128], index: 6, kind: output, shape index: {1}]  }
   0x1 LB: > { %s966_s22 = sadd.s32 4294967295, %s1179_s21   ;;  %p970_p0 = scmp.ge.s32.totalorder %s1179_s21, 1  ;;  %s1179_s21 = sphi %s1216_s21, %s17_s21  }
   0x2   : > { %p242_p1 = scmp.lt.s32.totalorder %s1179_s21, 3 }
   0x4   : > { %p243_p2 = pnand %p970_p0, %p242_p1 }
   0x5   : > { %p287_p3 = scmp.lt.s32.totalorder (!%p243_p2), %s966_s22, 1  ;;  %p978_p4 = scmp.ne.s32.totalorder (!%p243_p2), %s966_s22, 0 }
   0x6   : > { %246 = sbr.rel (%p243_p2) target bundleno = 347 (0x15b), region = 40 }
   0xd   : > { %s288_s23 = scalar_select %p287_p3, %s966_s22, 1 }
   0xe   : > { %315 = sbr.rel (%p978_p4) target bundleno = 21 (0x15), region = 44  ;;  %v316_v0 = vld [vmem:[%s1343_s0] sm:$0xf] (!%p978_p4) }
   0xf   : > { %s1224_s24 = sshll.u32 %s288_s23, 3  ;;  %s1050_s25 = sshll.u32 %s288_s23, 9  ;;  %317 = vst [vmem:[#allocation2] sm:$0xf] (!%p978_p4), %v316_v0 }
  0x10   : > { %s290_s28 = scalar_lea.vmem %s1344_s1, %s1224_s24  ;;  %s294_s7 = scalar_lea.vmem %s1345_s2, %s1224_s24 }
  0x11   : > { %s1237_s10 = scalar_lea.vmem %s1346_s3, %s1050_s25  ;;  %s975_s11 = sshll.u32 %s288_s23, 2 }
  0x12   : > { %s1242_s14 = scalar_lea.vmem %s1347_s4, %s975_s11  ;;  %s307_s17 = scalar_lea.vmem %s1348_s5, %s1224_s24 }
  0x13   : > { %s311_s20 = scalar_lea.vmem %s1349_s6, %s1224_s24 }
  0x15 PF: > { %v1059_v1 = vld [vmem:[%s1237_s10 + $0x4] ss:$16 sps:$4 sm:$0xff]   ;;  %v1061_v2 = vld [vmem:[%s1237_s10] ss:$16 sps:$4 sm:$0xff]   ;;  %v1070_v6 = vld [vmem:[%s1237_s10 + $0xc] ss:$16 sps:$4 sm:$0xff]  }
  0x16   : > { %735 = vmatprep.subr.bf16.mxu0 %v1059_v1  ;;  %v1062_v3 = vld [vmem:[%s1237_s10 + $0x24] ss:$16 sps:$4 sm:$0xff]   ;;  %v1064_v4 = vld [vmem:[%s1237_s10 + $0x20] ss:$16 sps:$4 sm:$0xff]   ;;  %v1073_v7 = vld [vmem:[%s1237_s10 + $0x8] ss:$16 sps:$4 sm:$0xff]   ;;  %776 = vmatprep.subr.bf16.mxu1 %v1070_v6  ;;  %v388_v6 = vlaneseq }
  0x17   : > { %736 = vmatpush1.bf16.msra.mxu0 %v1061_v2  ;;  %v1065_v5 = vld [vmem:[%s1237_s10 + $0x44] ss:$16 sps:$4 sm:$0xff]   ;;  %v1067_v8 = vld [vmem:[%s1237_s10 + $0x40] ss:$16 sps:$4 sm:$0xff]   ;;  %777 = vmatpush1.bf16.msra.mxu1 %v1073_v7  ;;  %v1076_v10 = vld [vmem:[%s1237_s10 + $0x2c] ss:$16 sps:$4 sm:$0xff]  }
  0x18   : > { %737 = vmatprep.subr.bf16.mxu0 %v1062_v3  ;;  %v1068_v9 = vld [vmem:[%s1237_s10 + $0x64] ss:$16 sps:$4 sm:$0xff]   ;;  %v1079_v11 = vld [vmem:[%s1237_s10 + $0x28] ss:$16 sps:$4 sm:$0xff]   ;;  %778 = vmatprep.subr.bf16.mxu1 %v1076_v10  ;;  %v1072_v12 = vld [vmem:[%s1237_s10 + $0x60] ss:$16 sps:$4 sm:$0xff]  }
  0x19   : > { %v1074_v13 = vld [vmem:[%s1237_s10 + $0x84] ss:$16 sps:$4 sm:$0xff]   ;;  %v1082_v14 = vld [vmem:[%s1237_s10 + $0x4c] ss:$16 sps:$4 sm:$0xff]   ;;  %v1085_v15 = vld [vmem:[%s1237_s10 + $0x48] ss:$16 sps:$4 sm:$0xff]  }
  0x1a   : > { %v1088_v16 = vld [vmem:[%s1237_s10 + $0x6c] ss:$16 sps:$4 sm:$0xff]   ;;  %v1078_v17 = vld [vmem:[%s1237_s10 + $0x80] ss:$16 sps:$4 sm:$0xff]   ;;  %v1080_v18 = vld [vmem:[%s1237_s10 + $0xa4] ss:$16 sps:$4 sm:$0xff]  }
  0x1b   : > { %738 = vmatpush1.bf16.msra.mxu0 %v1064_v4  ;;  %779 = vmatpush1.bf16.msra.mxu1 %v1079_v11  ;;  %v1091_v19 = vld [vmem:[%s1237_s10 + $0x68] ss:$16 sps:$4 sm:$0xff]   ;;  %v1094_v20 = vld [vmem:[%s1237_s10 + $0x8c] ss:$16 sps:$4 sm:$0xff]   ;;  %v1084_v21 = vld [vmem:[%s1237_s10 + $0xa0] ss:$16 sps:$4 sm:$0xff]  }
  0x1c   : > { %739 = vmatprep.subr.bf16.mxu0 %v1065_v5  ;;  %780 = vmatprep.subr.bf16.mxu1 %v1082_v14  ;;  %v1086_v22 = vld [vmem:[%s1237_s10 + $0xc4] ss:$16 sps:$4 sm:$0xff]   ;;  %v1097_v23 = vld [vmem:[%s1237_s10 + $0x88] ss:$16 sps:$4 sm:$0xff]   ;;  %v1100_v24 = vld [vmem:[%s1237_s10 + $0xac] ss:$16 sps:$4 sm:$0xff]  }
  0x1d   : > { %v1090_v25 = vld [vmem:[%s1237_s10 + $0xc0] ss:$16 sps:$4 sm:$0xff]   ;;  %v1092_v26 = vld [vmem:[%s1237_s10 + $0xe4] ss:$16 sps:$4 sm:$0xff]   ;;  %v1103_v27 = vld [vmem:[%s1237_s10 + $0xa8] ss:$16 sps:$4 sm:$0xff]  }
  0x1e   : > { %v1106_v28 = vld [vmem:[%s1237_s10 + $0xcc] ss:$16 sps:$4 sm:$0xff]   ;;  %v1096_v29 = vld [vmem:[%s1237_s10 + $0xe0] ss:$16 sps:$4 sm:$0xff]   ;;  %v1098_v30 = vld [vmem:[%s1237_s10 + $0x104] ss:$16 sps:$4 sm:$0xff]  }
  0x1f   : > { %740 = vmatpush1.bf16.msra.mxu0 %v1067_v8  ;;  %781 = vmatpush1.bf16.msra.mxu1 %v1085_v15  ;;  %v1109_v31 = vld [vmem:[%s1237_s10 + $0xc8] ss:$16 sps:$4 sm:$0xff]   ;;  %v1112_v32 = vld [vmem:[%s1237_s10 + $0xec] ss:$16 sps:$4 sm:$0xff]   ;;  %v1102_v33 = vld [vmem:[%s1237_s10 + $0x100] ss:$16 sps:$4 sm:$0xff]  }
  0x20   : > { %741 = vmatprep.subr.bf16.mxu0 %v1068_v9  ;;  %782 = vmatprep.subr.bf16.mxu1 %v1088_v16  ;;  %v1104_v34 = vld [vmem:[%s1237_s10 + $0x124] ss:$16 sps:$4 sm:$0xff]   ;;  %v1115_v35 = vld [vmem:[%s1237_s10 + $0xe8] ss:$16 sps:$4 sm:$0xff]   ;;  %v1118_v36 = vld [vmem:[%s1237_s10 + $0x10c] ss:$16 sps:$4 sm:$0xff]  }
  0x21   : > { %v1108_v37 = vld [vmem:[%s1237_s10 + $0x120] ss:$16 sps:$4 sm:$0xff]   ;;  %v1110_v38 = vld [vmem:[%s1237_s10 + $0x144] ss:$16 sps:$4 sm:$0xff]   ;;  %v1121_v39 = vld [vmem:[%s1237_s10 + $0x108] ss:$16 sps:$4 sm:$0xff]  }
  0x22   : > { %v1124_v40 = vld [vmem:[%s1237_s10 + $0x12c] ss:$16 sps:$4 sm:$0xff]   ;;  %v1114_v41 = vld [vmem:[%s1237_s10 + $0x140] ss:$16 sps:$4 sm:$0xff]   ;;  %v1116_v43 = vld [vmem:[%s1237_s10 + $0x164] ss:$16 sps:$4 sm:$0xff]  }
  0x23   : > { %742 = vmatpush1.bf16.msra.mxu0 %v1072_v12  ;;  %783 = vmatpush1.bf16.msra.mxu1 %v1091_v19  ;;  %v318_v42 = vld [vmem:[%s290_s28] sm:$0xff]  ;;  %v1127_v45 = vld [vmem:[%s1237_s10 + $0x128] ss:$16 sps:$4 sm:$0xff]   ;;  %v1130_v46 = vld [vmem:[%s1237_s10 + $0x14c] ss:$16 sps:$4 sm:$0xff]   ;;  %v389_v7 = vshrl.u32 %v388_v6, 7 }
  0x24   : > { %743 = vmatprep.subr.bf16.mxu0 %v1074_v13  ;;  %784 = vmatprep.subr.bf16.mxu1 %v1094_v20  ;;  %v319_v44 = vpack.c.bf16 %v318_v42, %v318_v42  ;;  %v1120_v47 = vld [vmem:[%s1237_s10 + $0x160] ss:$16 sps:$4 sm:$0xff]   ;;  %v1122_v48 = vld [vmem:[%s1237_s10 + $0x184] ss:$16 sps:$4 sm:$0xff]   ;;  %v1133_v49 = vld [vmem:[%s1237_s10 + $0x148] ss:$16 sps:$4 sm:$0xff]  }
  0x25   : > { %v1136_v50 = vld [vmem:[%s1237_s10 + $0x16c] ss:$16 sps:$4 sm:$0xff]   ;;  %v1126_v51 = vld [vmem:[%s1237_s10 + $0x180] ss:$16 sps:$4 sm:$0xff]   ;;  %v1128_v52 = vld [vmem:[%s1237_s10 + $0x1a4] ss:$16 sps:$4 sm:$0xff]  }
  0x26   : > { %320 = vst [vmem:[#allocation2 + $0x4] sm:$0xf] %v319_v44  ;;  %v1139_v53 = vld [vmem:[%s1237_s10 + $0x168] ss:$16 sps:$4 sm:$0xff]   ;;  %v1142_v55 = vld [vmem:[%s1237_s10 + $0x18c] ss:$16 sps:$4 sm:$0xff]  }
  0x27   : > { %744 = vmatpush1.bf16.msra.mxu0 %v1078_v17  ;;  %785 = vmatpush1.bf16.msra.mxu1 %v1097_v23  ;;  %v1132_v57 = vld [vmem:[%s1237_s10 + $0x1a0] ss:$16 sps:$4 sm:$0xff]   ;;  %v1134_v58 = vld [vmem:[%s1237_s10 + $0x1c4] ss:$16 sps:$4 sm:$0xff]   ;;  %v1145_v59 = vld [vmem:[%s1237_s10 + $0x188] ss:$16 sps:$4 sm:$0xff]  }
  0x28   : > { %745 = vmatprep.subr.bf16.mxu0 %v1080_v18  ;;  %786 = vmatprep.subr.bf16.mxu1 %v1100_v24  ;;  %v1148_v60 = vld [vmem:[%s1237_s10 + $0x1ac] ss:$16 sps:$4 sm:$0xff]   ;;  %v1138_v61 = vld [vmem:[%s1237_s10 + $0x1c0] ss:$16 sps:$4 sm:$0xff]   ;;  %v1140_v62 = vld [vmem:[%s1237_s10 + $0x1e4] ss:$16 sps:$4 sm:$0xff]  }
  0x29   : > { %v1150_v63 = vld [vmem:[%s1237_s10 + $0x1a8] ss:$16 sps:$4 sm:$0xff]   ;;  %v1151_v0 = vld [vmem:[%s1237_s10 + $0x1cc] ss:$16 sps:$4 sm:$0xff]   ;;  %v1144_v1 = vld [vmem:[%s1237_s10 + $0x1e0] ss:$16 sps:$4 sm:$0xff]  }
  0x2a   : > { %v1153_v2 = vld [vmem:[%s1237_s10 + $0x1c8] ss:$16 sps:$4 sm:$0xff]   ;;  %v1154_v3 = vld [vmem:[%s1237_s10 + $0x1ec] ss:$16 sps:$4 sm:$0xff]   ;;  %v390_v8 = vsub.s32 0, %v389_v7  ;;  %v394_v10 = vsub.s32 1, %v389_v7 }
  0x2b   : > { %746 = vmatpush1.bf16.msra.mxu0 %v1084_v21  ;;  %787 = vmatpush1.bf16.msra.mxu1 %v1103_v27  ;;  %v1156_v5 = vld [vmem:[%s1237_s10 + $0x1e8] ss:$16 sps:$4 sm:$0xff]   ;;  %v386_v9 = vld [vmem:[%s1242_s14] sm:$0xf]  ;;  %v402_v13 = vsub.s32 3, %v389_v7  ;;  %v398_v23 = vsub.s32 2, %v389_v7 }
  0x2c   : > { %747 = vmatprep.subr.bf16.mxu0 %v1086_v22  ;;  %788 = vmatprep.subr.bf16.mxu1 %v1106_v28  ;;  %v391_v11 = vrot.slane %v386_v9, %v390_v8  ;;  %v395_v12 = vrot.slane %v386_v9, %v394_v10 }
  0x2d   : > { %v321_v54 = vld [vmem:[#allocation2] sm:$0xff]  ;;  %v403_v21 = vrot.slane %v386_v9, %v402_v13  ;;  %v399_v28 = vrot.slane %v386_v9, %v398_v23 }
  0x2e   : > { %v980_v56 = vcombine.high %v321_v54, %v321_v54  ;;  %v979_v4 = vcombine.low %v321_v54, %v321_v54 }
  0x2f   : > { %748 = vmatpush1.bf16.msra.mxu0 %v1090_v25  ;;  %789 = vmatpush1.bf16.msra.mxu1 %v1109_v31 }
  0x30   : > { %749 = vmatprep.subr.bf16.mxu0 %v1092_v26  ;;  %790 = vmatprep.subr.bf16.mxu1 %v1112_v32 }
  0x31   : > { %767 = vmatprep.mubr.bf16.mxu0 %v980_v56  ;;  %808 = vmatprep.mubr.bf16.mxu1 %v980_v56 }
  0x33   : > { %750 = vmatpush1.bf16.msra.mxu0 %v1096_v29  ;;  %791 = vmatpush1.bf16.msra.mxu1 %v1115_v35 }
  0x34   : > { %751 = vmatprep.subr.bf16.mxu0 %v1098_v30  ;;  %792 = vmatprep.subr.bf16.mxu1 %v1118_v36 }
  0x37   : > { %752 = vmatpush1.bf16.msra.mxu0 %v1102_v33  ;;  %793 = vmatpush1.bf16.msra.mxu1 %v1121_v39 }
  0x38   : > { %753 = vmatprep.subr.bf16.mxu0 %v1104_v34  ;;  %794 = vmatprep.subr.bf16.mxu1 %v1124_v40 }
  0x3b   : > { %754 = vmatpush1.bf16.msra.mxu0 %v1108_v37  ;;  %795 = vmatpush1.bf16.msra.mxu1 %v1127_v45 }
  0x3c   : > { %755 = vmatprep.subr.bf16.mxu0 %v1110_v38  ;;  %796 = vmatprep.subr.bf16.mxu1 %v1130_v46  ;;  %v836_v38 = vld [vmem:[%s294_s7] sm:$0xff] }
  0x3f   : > { %756 = vmatpush1.bf16.msra.mxu0 %v1114_v41  ;;  %797 = vmatpush1.bf16.msra.mxu1 %v1133_v49 }
  0x40   : > { %757 = vmatprep.subr.bf16.mxu0 %v1116_v43  ;;  %798 = vmatprep.subr.bf16.mxu1 %v1136_v50 }
  0x43   : > { %758 = vmatpush1.bf16.msra.mxu0 %v1120_v47  ;;  %799 = vmatpush1.bf16.msra.mxu1 %v1139_v53 }
  0x44   : > { %759 = vmatprep.subr.bf16.mxu0 %v1122_v48  ;;  %800 = vmatprep.subr.bf16.mxu1 %v1142_v55 }
  0x47   : > { %760 = vmatpush1.bf16.msra.mxu0 %v1126_v51  ;;  %801 = vmatpush1.bf16.msra.mxu1 %v1145_v59 }
  0x48   : > { %761 = vmatprep.subr.bf16.mxu0 %v1128_v52  ;;  %802 = vmatprep.subr.bf16.mxu1 %v1148_v60 }
  0x4b   : > { %762 = vmatpush1.bf16.msra.mxu0 %v1132_v57  ;;  %803 = vmatpush1.bf16.msra.mxu1 %v1150_v63 }
  0x4c   : > { %763 = vmatprep.subr.bf16.mxu0 %v1134_v58  ;;  %804 = vmatprep.subr.bf16.mxu1 %v1151_v0 }
  0x4f   : > { %764 = vmatpush1.bf16.msra.mxu0 %v1138_v61  ;;  %805 = vmatpush1.bf16.msra.mxu1 %v1153_v2 }
  0x50   : > { %765 = vmatprep.subr.bf16.mxu0 %v1140_v62  ;;  %806 = vmatprep.subr.bf16.mxu1 %v1154_v3 }
  0x53   : > { %766 = vmatpush1.bf16.msra.mxu0 %v1144_v1  ;;  %807 = vmatpush1.bf16.msra.mxu1 %v1156_v5 }
  0x56   : > { %768 = vmatmul.mubr.bf16.vlgmr.msra.gmra.mrb[0].mxu0 %v979_v4  ;;  %809 = vmatmul.mubr.bf16.vlgmr.msra.gmra.mrb[0].mxu1 %v979_v4 }
 0x129   : > { %v769_v14 = vpop.f32.mrb[0].mxu0  ;;  %v810_v24 = vpop.f32.mrb[0].mxu1 }
 0x12a   : > { %v770_v15 = vadd.f32 %v769_v14, %v391_v11  ;;  %v771_v16 = vpop.f32.mrb[1].mxu0  ;;  %v812_v25 = vpop.f32.mrb[1].mxu1  ;;  %v811_v31 = vadd.f32 %v810_v24, %v399_v28 }
 0x12b   : > { %v772_v17 = vadd.f32 %v771_v16, %v395_v12  ;;  %v773_v18 = vpop.f32.mrb[2].mxu0  ;;  %v813_v26 = vadd.f32 %v812_v25, %v403_v21  ;;  %v814_v27 = vpop.f32.mrb[2].mxu1 }
 0x12c   : > { %v1045_v19 = vmul.f32 -1.442695, %v770_v15  ;;  %v774_v20 = vpop.f32.mrb[3].mxu0  ;;  %v815_v29 = vpop.f32.mrb[3].mxu1 }
 0x12d   : > { %v1046_v22 = vmul.f32 -1.442695, %v772_v17  ;;  %v1047_v30 = vmul.f32 -1.442695, %v813_v26 }
 0x12e   : > { %1157 = vpow2.f32 %v1045_v19 }
 0x12f   : > { %1159 = vpow2.f32 %v1046_v22 }
 0x130   : > { %1161 = vpow2.f32 %v1047_v30 }
 0x131   : > { %1163 = vtanh.f32 %v811_v31 }
 0x138   : > { %v1158_v32 = vpop.eup %1157 }
 0x139   : > { %v1160_v33 = vpop.eup %1159  ;;  %v820_v34 = vadd.f32 1.0, %v1158_v32 }
 0x13a   : > { %v826_v35 = vadd.f32 1.0, %v1160_v33  ;;  %v1162_v36 = vpop.eup %1161 }
 0x13b   : > { %1165 = vrcp.f32 %v820_v34  ;;  %v1164_v37 = vpop.eup %1163  ;;  %v833_v40 = vadd.f32 1.0, %v1162_v36 }
 0x13c   : > { %1167 = vrcp.f32 %v826_v35 }
 0x13d   : > { %1169 = vrcp.f32 %v833_v40 }
 0x145   : > { %v1166_v39 = vpop.eup %1165 }
 0x146   : > { %v1168_v41 = vpop.eup %1167  ;;  %v838_v42 = vmul.f32 %v1166_v39, %v1164_v37 }
 0x147   : > { %v837_v43 = vmul.f32 %v1168_v41, %v836_v38  ;;  %v1170_v45 = vpop.eup %1169 }
 0x149   : > { %v839_v44 = vadd.f32 %v838_v42, %v837_v43 }
 0x14b   : > { %1171 = vtanh.f32 %v839_v44  ;;  %843 = vst [vmem:[%s311_s20] sm:$0xff] %v839_v44 }
 0x155   : > { %v1172_v46 = vpop.eup %1171 }
 0x156   : > { %v841_v47 = vmul.f32 %v1172_v46, %v1170_v45 }
 0x158   : > { %842 = vst [vmem:[%s307_s17] sm:$0xff] %v841_v47  ;;  %v844_v48 = vpack.c.bf16 %v841_v47, %v841_v47 }
 0x15a   : > { %845 = vst [vmem:[#allocation2] sm:$0xf] %v844_v48 }
 0x15b PF: > { %s17_s21 = sadd.s32 1, %s1179_s21  }
 0x15c   : > { %p14_p5 = scmp.ge.s32.totalorder %s17_s21, 4  }
 0x15e   :  { %16 = sbr.rel (!%p14_p5) target bundleno = 1 (0x1), region = 95 }

</bundles_post_ra>
